<compile_context>
chip_gen: v6e
topology: v6e:2x2x1
jax: 0.10.0
libtpu: 0.0.40
codegen_flags: <defaults>
</compile_context>

<pallas_src>
import functools

import jax
import jax.numpy as jnp
import numpy as np
from jax.experimental import pallas as pl
from jax.experimental.pallas import tpu as pltpu


# ---------------------------------------------------------------------------
# Kernels
# ---------------------------------------------------------------------------

def _gn_channels_last_kernel(x_ref, w_ref, b_ref, mcg_ref, mgc_ref, o_ref, *,
                             eps, inv_n):
    """Block: x (Lf, Cf) channels-last (lane-folded).  Stats per group pooled
    over all rows; group segment-reduce / broadcast-back via small one-hot
    matmuls (masks are precomputed inputs; the MXU is idle anyway)."""
    x = x_ref[...]                                      # (Lf, Cf), native dtype
    xf = x.astype(jnp.float32)

    s1 = jnp.sum(xf, axis=0, keepdims=True)             # (1, Cf) sublane reduce
    s2 = jnp.sum(xf * xf, axis=0, keepdims=True)        # (1, Cf)
    s12 = jnp.concatenate([s1, s2], axis=0)             # (2, Cf)
    g12 = jnp.dot(s12, mcg_ref[...],
                  preferred_element_type=jnp.float32)   # (2, G)

    mean_g = g12[0:1, :] * inv_n                        # (1, G)
    ex2_g = g12[1:2, :] * inv_n
    # TODO(synk): one-pass E[x^2]-mean^2 can cancel for |mean| >> std; add a
    # per-group pre-shift if such inputs are expected.
    var_g = jnp.maximum(ex2_g - mean_g * mean_g, 0.0)
    inv_g = jax.lax.rsqrt(var_g + eps)

    mi = jnp.concatenate([mean_g, inv_g], axis=0)       # (2, G)
    mi_c = jnp.dot(mi, mgc_ref[...],
                   preferred_element_type=jnp.float32)  # (2, Cf)
    mean_c = mi_c[0:1, :]
    inv_c = mi_c[1:2, :]

    w = w_ref[...].astype(jnp.float32)                  # (1, Cf)
    b = b_ref[...].astype(jnp.float32)
    scale = w * inv_c
    shift = b - mean_c * scale
    # f32 apply, single cast at the store (torch-matching precision).
    o_ref[...] = (xf * scale + shift).astype(o_ref.dtype)


def _gn_rows_kernel(x_ref, w_ref, b_ref, mcg_ref, mgc_ref, o_ref, *,
                    eps, inv_n):
    """Block: x (TB, C) -- 2D GroupNorm input, independent per-row group stats."""
    x = x_ref[...]
    xf = x.astype(jnp.float32)
    mcg = mcg_ref[...]                                  # (C, G)
    s1 = jnp.dot(xf, mcg, preferred_element_type=jnp.float32)        # (TB, G)
    s2 = jnp.dot(xf * xf, mcg, preferred_element_type=jnp.float32)   # (TB, G)
    mean = s1 * inv_n
    var = jnp.maximum(s2 * inv_n - mean * mean, 0.0)
    inv = jax.lax.rsqrt(var + eps)
    mgc = mgc_ref[...]                                  # (G, C)
    mean_c = jnp.dot(mean, mgc, preferred_element_type=jnp.float32)  # (TB, C)
    inv_c = jnp.dot(inv, mgc, preferred_element_type=jnp.float32)    # (TB, C)
    w = w_ref[...].astype(jnp.float32)                  # (1, C)
    b = b_ref[...].astype(jnp.float32)
    scale = w * inv_c
    shift = b - mean_c * scale
    o_ref[...] = (xf * scale + shift).astype(o_ref.dtype)


def _gn_channels_first_kernel(x_ref, w_ref, b_ref, o_ref, *, eps, inv_n):
    """Block: x (GB, Cg, S) = GB whole groups of one batch element."""
    x = x_ref[...]
    xf = x.astype(jnp.float32)
    s1 = jnp.sum(jnp.sum(xf, axis=2, keepdims=True), axis=1, keepdims=True)
    s2 = jnp.sum(jnp.sum(xf * xf, axis=2, keepdims=True), axis=1, keepdims=True)
    mean = s1 * inv_n                                   # (GB, 1, 1)
    var = jnp.maximum(s2 * inv_n - mean * mean, 0.0)
    inv = jax.lax.rsqrt(var + eps)
    w = w_ref[...].astype(jnp.float32)                  # (GB, Cg, 1)
    b = b_ref[...].astype(jnp.float32)
    scale = w * inv
    shift = b - mean * scale
    o_ref[...] = (xf * scale + shift).astype(o_ref.dtype)


# ---------------------------------------------------------------------------
# Wrappers
# ---------------------------------------------------------------------------

def _compiler_params(block_elems, itemsize, semantics):
    # Double-buffered in/out blocks + one f32 temp of the block + headroom.
    # Raised above v5e's 16 MiB default, capped at v7x's 64 MiB physical VMEM.
    per_step = int(block_elems) * (4 * int(itemsize) + 4)
    limit = int(min(64 << 20, max(32 << 20, per_step + (8 << 20))))
    return pltpu.CompilerParams(dimension_semantics=semantics,
                                vmem_limit_bytes=limit)


def _cost(numel, itemsize, n_stats):
    # GroupNorm is HBM-bound: read + write each element once.
    return pl.CostEstimate(flops=int(10 * numel),
                           transcendentals=int(n_stats),
                           bytes_accessed=int(2 * numel * itemsize))


def _group_masks(cols_per_row, C, num_groups):
    """One-hot (Cf, G) / (G, Cf) masks: folded column j -> channel j % C ->
    group (j % C) // (C // num_groups).  Built once in numpy."""
    Cg = C // num_groups
    grp = (np.arange(cols_per_row) % C) // Cg
    m_cg = (grp[:, None] == np.arange(num_groups)[None, :]).astype(np.float32)
    return jnp.asarray(m_cg), jnp.asarray(np.ascontiguousarray(m_cg.T))


def _groupnorm_channels_last(x_blc, weight, bias, *, num_groups, eps):
    """GroupNorm on channels-last (B, L, C); grid over batch.  No transposes.
    When C < 128, k consecutive L rows are folded into the lane axis (free
    contiguous reshape) so stores are lane-dense."""
    B, L, C = x_blc.shape
    Cg = C // num_groups
    k = 1
    if C < 128:
        k = max(1, 128 // C)
        while k > 1 and L % k:
            k -= 1
    Lf, Cf = L // k, k * C
    xr = x_blc.reshape(B, Lf, Cf)                 # contiguous, no HBM movement
    w_f = jnp.tile(weight.reshape(1, C).astype(jnp.float32), (1, k))
    b_f = jnp.tile(bias.reshape(1, C).astype(jnp.float32), (1, k))
    m_cg, m_gc = _group_masks(Cf, C, num_groups)

    kernel = functools.partial(_gn_channels_last_kernel, eps=eps,
                               inv_n=1.0 / float(L * Cg))
    # TODO(synk): for L*C blocks too large for VMEM (v7x: 64 MiB), add an L
    # tile axis with a two-pass stats-then-apply structure; that also lets a
    # B=1 input feed both v7x TensorCores.
    y = pl.pallas_call(
        kernel,
        out_shape=jax.ShapeDtypeStruct((B, Lf, Cf), x_blc.dtype),
        grid=(B,),
        in_specs=[
            pl.BlockSpec((None, Lf, Cf), lambda i: (i, 0, 0)),
            pl.BlockSpec((1, Cf), lambda i: (0, 0)),
            pl.BlockSpec((1, Cf), lambda i: (0, 0)),
            pl.BlockSpec((Cf, num_groups), lambda i: (0, 0)),
            pl.BlockSpec((num_groups, Cf), lambda i: (0, 0)),
        ],
        out_specs=pl.BlockSpec((None, Lf, Cf), lambda i: (i, 0, 0)),
        compiler_params=_compiler_params(Lf * Cf, x_blc.dtype.itemsize,
                                         ("parallel",)),
        cost_estimate=_cost(B * L * C, x_blc.dtype.itemsize, B * num_groups),
    )(xr, w_f, b_f, m_cg, m_gc)
    return y.reshape(B, L, C)


def _groupnorm_rows(x_bc, weight, bias, *, num_groups, eps):
    """GroupNorm on 2D (B, C): row-tiled grid, per-row group stats via the
    one-hot matmuls (full sublane/lane fill instead of one row per step)."""
    B, C = x_bc.shape
    Cg = C // num_groups
    TB = int(min(256, B))                      # full rows if small, else 256
    nb = -(-B // TB)
    Bp = nb * TB
    xp = x_bc if Bp == B else jnp.pad(x_bc, ((0, Bp - B), (0, 0)))
    w2 = weight.reshape(1, C).astype(jnp.float32)
    b2 = bias.reshape(1, C).astype(jnp.float32)
    m_cg, m_gc = _group_masks(C, C, num_groups)

    kernel = functools.partial(_gn_rows_kernel, eps=eps, inv_n=1.0 / float(Cg))
    y = pl.pallas_call(
        kernel,
        out_shape=jax.ShapeDtypeStruct((Bp, C), x_bc.dtype),
        grid=(nb,),
        in_specs=[
            pl.BlockSpec((TB, C), lambda i: (i, 0)),
            pl.BlockSpec((1, C), lambda i: (0, 0)),
            pl.BlockSpec((1, C), lambda i: (0, 0)),
            pl.BlockSpec((C, num_groups), lambda i: (0, 0)),
            pl.BlockSpec((num_groups, C), lambda i: (0, 0)),
        ],
        out_specs=pl.BlockSpec((TB, C), lambda i: (i, 0)),
        compiler_params=_compiler_params(TB * C, x_bc.dtype.itemsize,
                                         ("parallel",)),
        cost_estimate=_cost(B * C, x_bc.dtype.itemsize, B * num_groups),
    )(xp, w2, b2, m_cg, m_gc)
    return y[:B] if Bp != B else y


def _pick_groups_per_block(G, Cg, S, itemsize, budget_bytes=4 << 20):
    """Largest divisor of G whose (GB, Cg, S) block (incl. f32 temp) fits budget."""
    best = 1
    for gb in range(1, G + 1):
        if G % gb:
            continue
        if gb * Cg * S * (int(itemsize) + 4) <= budget_bytes:
            best = gb
    return best


def _groupnorm_channels_first(x_bcs, weight, bias, *, num_groups, eps):
    """GroupNorm on channels-first (B, C, S); packs GB whole groups per grid
    step so small Cg*S groups still fill sublanes and amortize step overhead."""
    B, C, S = x_bcs.shape
    G = num_groups
    Cg = C // G
    GB = _pick_groups_per_block(G, Cg, S, x_bcs.dtype.itemsize)
    xg = x_bcs.reshape(B, G, Cg, S)          # contiguous reshape, no movement
    w4 = weight.reshape(G, Cg, 1).astype(jnp.float32)
    b4 = bias.reshape(G, Cg, 1).astype(jnp.float32)
    kernel = functools.partial(_gn_channels_first_kernel, eps=eps,
                               inv_n=1.0 / float(Cg * S))
    # TODO(synk): if even a single (1, Cg, S) group exceeds VMEM, tile S with
    # a two-pass (accumulate stats, then apply) structure.
    y = pl.pallas_call(
        kernel,
        out_shape=jax.ShapeDtypeStruct((B, G, Cg, S), x_bcs.dtype),
        grid=(B, G // GB),
        in_specs=[
            pl.BlockSpec((None, GB, Cg, S), lambda b, g: (b, g, 0, 0)),
            pl.BlockSpec((GB, Cg, 1), lambda b, g: (g, 0, 0)),
            pl.BlockSpec((GB, Cg, 1), lambda b, g: (g, 0, 0)),
        ],
        out_specs=pl.BlockSpec((None, GB, Cg, S), lambda b, g: (b, g, 0, 0)),
        compiler_params=_compiler_params(GB * Cg * S, x_bcs.dtype.itemsize,
                                         ("parallel", "parallel")),
        cost_estimate=_cost(B * C * S, x_bcs.dtype.itemsize, B * G),
    )(xg, w4, b4)
    return y.reshape(B, C, S)


class MyGroupNormPallas:
    """JAX/Pallas equivalent of flare's mygroupnorm module."""

    def __init__(self, num_groups, num_channels, key, eps=1e-5):
        assert num_channels % num_groups == 0
        self.num_groups = num_groups
        self.num_channels = num_channels
        self.eps = eps
        kw, kb = jax.random.split(key)
        # PyTorch default affine is ones/zeros; perturb so the path is exercised.
        self.weight = 1.0 + 0.1 * jax.random.normal(kw, (num_channels,), jnp.float32)
        self.bias = 0.1 * jax.random.normal(kb, (num_channels,), jnp.float32)

    def __call__(self, x):
        G, eps = self.num_groups, self.eps
        if x.ndim == 3:
            # torch: permute -> GroupNorm -> permute.  Handled natively
            # channels-last so no HBM transposes are materialized.
            return _groupnorm_channels_last(
                x, self.weight, self.bias, num_groups=G, eps=eps)
        elif x.ndim == 2:
            return _groupnorm_rows(
                x, self.weight, self.bias, num_groups=G, eps=eps)
        elif x.ndim >= 4:
            B, C = x.shape[0], x.shape[1]
            S = int(np.prod(x.shape[2:]))
            y = _groupnorm_channels_first(
                x.reshape(B, C, S), self.weight, self.bias,
                num_groups=G, eps=eps)
            return y.reshape(x.shape)
        else:
            raise ValueError(f"unsupported rank {x.ndim}")


# ---------------------------------------------------------------------------
# Reference + test
# ---------------------------------------------------------------------------

def _groupnorm_ref_channels_first(x, weight, bias, num_groups, eps):
    """Pure-numpy channels-first reference, matching torch.nn.GroupNorm."""
    x64 = np.asarray(x, dtype=np.float64)
    shape = x64.shape
    B, C = shape[0], shape[1]
    S = int(np.prod(shape[2:])) if x64.ndim > 2 else 1
    xr = x64.reshape(B, num_groups, (C // num_groups) * S)
    mean = xr.mean(axis=2, keepdims=True)
    var = xr.var(axis=2, keepdims=True)          # biased variance
    xn = ((xr - mean) / np.sqrt(var + eps)).reshape(B, C, S)
    y = xn * np.asarray(weight, np.float64).reshape(1, C, 1) \
        + np.asarray(bias, np.float64).reshape(1, C, 1)
    return y.reshape(shape)


if __name__ == "__main__":
    key = jax.random.PRNGKey(0)
    k_param, k3, k4, k2 = jax.random.split(key, 4)

    num_groups, num_channels = 4, 32
    gn = MyGroupNormPallas(num_groups, num_channels, k_param)

    # 3D channels-last (B, L, C): the permute branch of the torch module.
    x3 = jax.random.normal(k3, (2, 8, num_channels), jnp.float32)
    y3 = jax.block_until_ready(gn(x3))

    # 4D channels-first NCHW.
    x4 = jax.random.normal(k4, (2, num_channels, 16, 16), jnp.float32)
    y4 = jax.block_until_ready(gn(x4))

    # 2D (B, C).
    x2 = jax.random.normal(k2, (16, num_channels), jnp.float32)
    y2 = jax.block_until_ready(gn(x2))

    w = np.asarray(gn.weight)
    b = np.asarray(gn.bias)

    ref3 = _groupnorm_ref_channels_first(
        np.transpose(np.asarray(x3), (0, 2, 1)), w, b, num_groups, gn.eps)
    ref3 = np.transpose(ref3, (0, 2, 1))
    np.testing.assert_allclose(np.asarray(y3), ref3, rtol=1e-4, atol=1e-4)

    ref4 = _groupnorm_ref_channels_first(np.asarray(x4), w, b, num_groups, gn.eps)
    np.testing.assert_allclose(np.asarray(y4), ref4, rtol=1e-4, atol=1e-4)

    ref2 = _groupnorm_ref_channels_first(np.asarray(x2), w, b, num_groups, gn.eps)
    np.testing.assert_allclose(np.asarray(y2), ref2, rtol=1e-4, atol=1e-4)

    print("KERNEL_OK")
</pallas_src>

<mosaic_0001>
module attributes {stable_mosaic.version = 11 : i64} {
  func.func @_gn_channels_last_kernel(%arg0: i32, %arg1: memref<1x2x128xf32, #tpu.memory_space<vmem>>, %arg2: memref<1x128xf32, #tpu.memory_space<vmem>>, %arg3: memref<1x128xf32, #tpu.memory_space<vmem>>, %arg4: memref<128x4xf32, #tpu.memory_space<vmem>>, %arg5: memref<4x128xf32, #tpu.memory_space<vmem>>, %arg6: memref<1x2x128xf32, #tpu.memory_space<vmem>>) attributes {dimension_semantics = [#tpu.dimension_semantics<parallel>], iteration_bounds = array<i64: 2>, scalar_prefetch = 0 : i64, scratch_operands = 0 : i64, tpu.core_type = #tpu.core_type<tc>, window_params = [{transform_indices = @transform_0, window_bounds = array<i64: 1, 2, 128>}, {pipeline_mode = #tpu.pipeline_mode<synchronous>, transform_indices = @transform_1, window_bounds = array<i64: 1, 128>}, {pipeline_mode = #tpu.pipeline_mode<synchronous>, transform_indices = @transform_2, window_bounds = array<i64: 1, 128>}, {pipeline_mode = #tpu.pipeline_mode<synchronous>, transform_indices = @transform_3, window_bounds = array<i64: 128, 4>}, {pipeline_mode = #tpu.pipeline_mode<synchronous>, transform_indices = @transform_4, window_bounds = array<i64: 4, 128>}, {transform_indices = @transform_5, window_bounds = array<i64: 1, 2, 128>}]} {
    %c0 = arith.constant 0 : index
    %c0_0 = arith.constant 0 : index
    %c0_1 = arith.constant 0 : index
    %0 = vector.load %arg1[%c0, %c0_0, %c0_1] : memref<1x2x128xf32, #tpu.memory_space<vmem>>, vector<1x2x128xf32>
    %1 = vector.shape_cast %0 : vector<1x2x128xf32> to vector<2x128xf32>
    %cst = arith.constant dense<0.000000e+00> : vector<128xf32>
    %2 = vector.multi_reduction <add>, %1, %cst [0] : vector<2x128xf32> to vector<128xf32>
    %3 = vector.shape_cast %2 : vector<128xf32> to vector<1x128xf32>
    %4 = arith.mulf %1, %1 : vector<2x128xf32>
    %cst_2 = arith.constant dense<0.000000e+00> : vector<128xf32>
    %5 = vector.multi_reduction <add>, %4, %cst_2 [0] : vector<2x128xf32> to vector<128xf32>
    %6 = vector.shape_cast %5 : vector<128xf32> to vector<1x128xf32>
    %7 = tpu.concatenate %3, %6 in 0 : vector<1x128xf32>, vector<1x128xf32> -> vector<2x128xf32>
    %c0_3 = arith.constant 0 : index
    %c0_4 = arith.constant 0 : index
    %8 = vector.load %arg4[%c0_3, %c0_4] : memref<128x4xf32, #tpu.memory_space<vmem>>, vector<128x4xf32>
    %cst_5 = arith.constant dense<0.000000e+00> : vector<2x4xf32>
    %9 = tpu.matmul %7, %8, %cst_5 {dimension_numbers = #tpu.dot_dimension_numbers<[1], [0], [0], [1], [0, 0, 1, 1], [], []>} : vector<2x128xf32>, vector<128x4xf32>, vector<2x4xf32> -> vector<2x4xf32>
    %10 = vector.extract_strided_slice %9 {offsets = [0, 0], sizes = [1, 4], strides = [1, 1]} : vector<2x4xf32> to vector<1x4xf32>
    %cst_6 = arith.constant 1.562500e-02 : f32
    %11 = vector.broadcast %cst_6 : f32 to vector<1x4xf32>
    %12 = arith.mulf %10, %11 : vector<1x4xf32>
    %13 = vector.extract_strided_slice %9 {offsets = [1, 0], sizes = [1, 4], strides = [1, 1]} : vector<2x4xf32> to vector<1x4xf32>
    %cst_7 = arith.constant 1.562500e-02 : f32
    %14 = vector.broadcast %cst_7 : f32 to vector<1x4xf32>
    %15 = arith.mulf %13, %14 : vector<1x4xf32>
    %16 = arith.mulf %12, %12 : vector<1x4xf32>
    %17 = arith.subf %15, %16 : vector<1x4xf32>
    %cst_8 = arith.constant 0.000000e+00 : f32
    %18 = vector.broadcast %cst_8 : f32 to vector<1x4xf32>
    %19 = arith.maximumf %17, %18 : vector<1x4xf32>
    %cst_9 = arith.constant 9.99999974E-6 : f32
    %20 = vector.broadcast %cst_9 : f32 to vector<1x4xf32>
    %21 = arith.addf %19, %20 : vector<1x4xf32>
    %22 = math.rsqrt %21 : vector<1x4xf32>
    %23 = tpu.concatenate %12, %22 in 0 : vector<1x4xf32>, vector<1x4xf32> -> vector<2x4xf32>
    %c0_10 = arith.constant 0 : index
    %c0_11 = arith.constant 0 : index
    %24 = vector.load %arg5[%c0_10, %c0_11] : memref<4x128xf32, #tpu.memory_space<vmem>>, vector<4x128xf32>
    %cst_12 = arith.constant dense<0.000000e+00> : vector<2x128xf32>
    %25 = tpu.matmul %23, %24, %cst_12 {dimension_numbers = #tpu.dot_dimension_numbers<[1], [0], [0], [1], [0, 0, 1, 1], [], []>} : vector<2x4xf32>, vector<4x128xf32>, vector<2x128xf32> -> vector<2x128xf32>
    %26 = vector.extract_strided_slice %25 {offsets = [0, 0], sizes = [1, 128], strides = [1, 1]} : vector<2x128xf32> to vector<1x128xf32>
    %27 = vector.extract_strided_slice %25 {offsets = [1, 0], sizes = [1, 128], strides = [1, 1]} : vector<2x128xf32> to vector<1x128xf32>
    %c0_13 = arith.constant 0 : index
    %c0_14 = arith.constant 0 : index
    %28 = vector.load %arg2[%c0_13, %c0_14] : memref<1x128xf32, #tpu.memory_space<vmem>>, vector<1x128xf32>
    %c0_15 = arith.constant 0 : index
    %c0_16 = arith.constant 0 : index
    %29 = vector.load %arg3[%c0_15, %c0_16] : memref<1x128xf32, #tpu.memory_space<vmem>>, vector<1x128xf32>
    %30 = arith.mulf %28, %27 : vector<1x128xf32>
    %31 = arith.mulf %26, %30 : vector<1x128xf32>
    %32 = arith.subf %29, %31 : vector<1x128xf32>
    %33 = vector.broadcast %30 : vector<1x128xf32> to vector<2x128xf32>
    %34 = arith.mulf %1, %33 : vector<2x128xf32>
    %35 = vector.broadcast %32 : vector<1x128xf32> to vector<2x128xf32>
    %36 = arith.addf %34, %35 : vector<2x128xf32>
    %c0_17 = arith.constant 0 : index
    %c0_18 = arith.constant 0 : index
    %c0_19 = arith.constant 0 : index
    %37 = vector.load %arg6[%c0_17, %c0_18, %c0_19] : memref<1x2x128xf32, #tpu.memory_space<vmem>>, vector<1x2x128xf32>
    %38 = vector.shape_cast %37 : vector<1x2x128xf32> to vector<2x128xf32>
    %39 = vector.shape_cast %36 : vector<2x128xf32> to vector<1x2x128xf32>
    tpu.vector_store %arg6[%c0_17, %c0_18, %c0_19], %39 {strides = array<i32>} : memref<1x2x128xf32, #tpu.memory_space<vmem>>, vector<1x2x128xf32>,
    return
  }
  func.func @transform_0(%arg0: i32) -> (i32, i32, i32) {
    %c0_i32 = arith.constant 0 : i32
    %c0_i32_0 = arith.constant 0 : i32
    %c0_i32_1 = arith.constant 0 : i32
    return %arg0, %c0_i32, %c0_i32_0 : i32, i32, i32
  }
  func.func @transform_1(%arg0: i32) -> (i32, i32) {
    %c0_i32 = arith.constant 0 : i32
    %c0_i32_0 = arith.constant 0 : i32
    %c0_i32_1 = arith.constant 0 : i32
    return %c0_i32, %c0_i32_0 : i32, i32
  }
  func.func @transform_2(%arg0: i32) -> (i32, i32) {
    %c0_i32 = arith.constant 0 : i32
    %c0_i32_0 = arith.constant 0 : i32
    %c0_i32_1 = arith.constant 0 : i32
    return %c0_i32, %c0_i32_0 : i32, i32
  }
  func.func @transform_3(%arg0: i32) -> (i32, i32) {
    %c0_i32 = arith.constant 0 : i32
    %c0_i32_0 = arith.constant 0 : i32
    %c0_i32_1 = arith.constant 0 : i32
    return %c0_i32, %c0_i32_0 : i32, i32
  }
  func.func @transform_4(%arg0: i32) -> (i32, i32) {
    %c0_i32 = arith.constant 0 : i32
    %c0_i32_0 = arith.constant 0 : i32
    %c0_i32_1 = arith.constant 0 : i32
    return %c0_i32, %c0_i32_0 : i32, i32
  }
  func.func @transform_5(%arg0: i32) -> (i32, i32, i32) {
    %c0_i32 = arith.constant 0 : i32
    %c0_i32_0 = arith.constant 0 : i32
    %c0_i32_1 = arith.constant 0 : i32
    return %arg0, %c0_i32, %c0_i32_0 : i32, i32, i32
  }
}

</mosaic_0001>

<bundles_post_ra>
// kernel: tpu_custom_call.1
= control target key start
LH: loop header
LB: loop body
LE: loop exit
PB: predicated region body
PF: predicated region fallthrough
CT: control target
= control target key end

     0   :  { %10 = vsyncpa [#allocation3], 0  ;;  %s906_s0 = inlined_call_operand.vmem [shape: f32[2,2,128], index: 0, kind: input, shape index: {}]   ;;  %s907_s1 = inlined_call_operand.vmem [shape: f32[1,128], index: 1, kind: input, shape index: {}]   ;;  %s908_s2 = inlined_call_operand.vmem [shape: f32[1,128], index: 2, kind: input, shape index: {}]   ;;  %s909_s3 = inlined_call_operand.vmem [shape: f32[128,4], index: 3, kind: input, shape index: {}]   ;;  %s910_s4 = inlined_call_operand.vmem [shape: f32[4,128], index: 4, kind: input, shape index: {}]   ;;  %s911_s5 = inlined_call_operand.hbm [shape: f32[2,2,128], index: 5, kind: output, shape index: {}]  }
   0x1   :  { %12 = vsyncpa [#allocation3 + $0x1], 0  ;;  %s735_s18 = smov 0   ;;  %s737_s19 = smov 0  }
   0x2   :  { %s739_s20 = smov 0   ;;  %s741_s21 = smov 0  }
   0x3 LB: > { %s756_s22 = sadd.s32 4294967295, %s699_s21   ;;  %s524_s23 = sadd.s32 4294967294, %s699_s21   ;;  %s699_s21 = sphi %s741_s21, %s917_s21   ;;  %s695_s20 = sphi %s739_s20, %s916_s20   ;;  %s691_s19 = sphi %s737_s19, %s915_s19   ;;  %s687_s18 = sphi %s735_s18, %s914_s18  }
   0x4   : > { %s760_s24 = sadd.s32 1, %s699_s21   ;;  %s135_s25 = sadd.s32 1, %s695_s20 }
   0x5   : > { %s132_s26 = ssub.s32 %s699_s21, %s760_s24  ;;  %p145_p0 = scmp.ne.s32.totalorder %s695_s20, %s691_s19 }
   0x6   : > { %p133_p1 = scmp.eq.s32.totalorder %s132_s26, 0  ;;  %p146_p2 = scmp.eq.s32.totalorder %s756_s22, 1 }
   0x7   : > { %p151_p3 = scmp.ne.s32.totalorder %s691_s19, %s687_s18  ;;  %p152_p4 = scmp.eq.s32.totalorder %s524_s23, 1 }
   0x8   : > { %s771_s27 = scalar_select %p133_p1, %s695_s20, %s135_s25  }
   0x9   : > { %p773_p5 = por %p146_p2, %p145_p0  ;;  %p777_p6 = por %p152_p4, %p151_p3 }
   0xa   : > { %p527_p7 = scmp.ge.s32.totalorder %s699_s21, 1  ;;  %p189_p8 = scmp.lt.s32.totalorder %s699_s21, 3 }
   0xc   : > { %p190_p9 = pnand %p527_p7, %p189_p8 }
   0xd   : > { %p216_p10 = scmp.lt.s32.totalorder (!%p190_p9), %s756_s22, 1  ;;  %s533_s23 = sshll.u32 (!%p190_p9), %s756_s22, 5 }
   0xe   : > { %193 = sbr.rel (%p190_p9) target bundleno = 494 (0x1ee), region = 40  ;;  %s463_s7 = scalar_lea.hbm (!%p190_p9), %s911_s5, %s533_s23 }
   0xf   : > { %s704_s10 = smov (!%p190_p9), [#allocation2]  }
  0x13   : > { %v254_v0 = vld [vmem:[%s909_s3 + $0x78] sm:$0xff]  ;;  %v701_v1 = vmov 0.0   ;;  %v253_v2 = vld [vmem:[%s909_s3 + $0x70] sm:$0xff]  ;;  %vm702_vm0 = vmmov 0   ;;  %s217_s9 = scalar_select %p216_p10, %s756_s22, 1  ;;  %v252_v3 = vld [vmem:[%s909_s3 + $0x68] sm:$0xff]  ;;  %v420_v47 = vlaneseq }
  0x14   : > { %555 = vmatprep.subr.mxu0 %v701_v1  ;;  %587 = vmatprep.mubr.msk.f32.mxu0 %vm702_vm0, %v701_v1  ;;  %vm221_vm1 = vcmask 1041408   ;;  %v251_v4 = vld [vmem:[%s909_s3 + $0x60] sm:$0xff]  ;;  %v250_v6 = vld [vmem:[%s909_s3 + $0x58] sm:$0xff]  ;;  %v249_v10 = vld [vmem:[%s909_s3 + $0x50] sm:$0xff]  ;;  %vm237_vm2 = vcmask 1040384   ;;  %vm340_vm3 = vcmask 1043456  }
  0x15   : > { %556 = vmatpush3.msra.mxu0 %v254_v0  ;;  %590 = vmatprep.subr.mxu1 %v701_v1  ;;  %s529_s12 = sshll.u32 %s217_s9, 1  ;;  %v248_v14 = vld [vmem:[%s909_s3 + $0x48] sm:$0xff]  ;;  %v247_v16 = vld [vmem:[%s909_s3 + $0x40] sm:$0xff]  ;;  %v246_v19 = vld [vmem:[%s909_s3 + $0x38] sm:$0xff]  ;;  %vm336_vm4 = vcmask 31744   ;;  %v421_v49 = vshrl.u32 %v420_v47, 7 }
  0x16   : > { %557 = vmatprep.subr.mxu0 %v701_v1  ;;  %592 = vmatprep.mubr.msk.f32.mxu1 %vm702_vm0, %v701_v1  ;;  %s219_s17 = scalar_lea.vmem %s906_s0, %s529_s12  ;;  %v245_v20 = vld [vmem:[%s909_s3 + $0x30] sm:$0xff]  ;;  %v244_v23 = vld [vmem:[%s909_s3 + $0x28] sm:$0xff]  ;;  %v243_v24 = vld [vmem:[%s909_s3 + $0x20] sm:$0xff]  ;;  %v703_v45 = vmov 1966171168   ;;  %s213_s12 = sand.u32 1, %s691_s19  }
  0x17   : > { %558 = vmatpush3.msra.mxu0 %v253_v2  ;;  %v806_v5 = vld [vmem:[%s219_s17] sm:$0x3]  ;;  %v242_v27 = vld [vmem:[%s909_s3 + $0x18] sm:$0xff]  ;;  %v241_v28 = vld [vmem:[%s909_s3 + $0x10] sm:$0xff]  ;;  %v418_v46 = vunpack.c.l.s4 %v703_v45  ;;  %v439_v57 = vsub.s32 0, %v421_v49  ;;  %s528_s15 = sshll.u32 %s213_s12, 1 }
  0x18   : > { %559 = vmatprep.subr.mxu0 %v701_v1  ;;  %v222_v7 = vsel %vm221_vm1, %v806_v5, 0.0  ;;  %v229_v8 = vmul.f32 %v806_v5, %v806_v5  ;;  %v240_v31 = vld [vmem:[%s909_s3 + $0x8] sm:$0xff]  ;;  %v239_v32 = vld [vmem:[%s909_s3] sm:$0xff]  ;;  %s215_s25 = scalar_lea.vmem [#allocation2], %s528_s15  ;;  %s452_s8 = scalar_lea.sflag [#allocation3], %s213_s12 }
  0x19   : > { %560 = vmatpush3.msra.mxu0 %v252_v3  ;;  %v223_v9 = vrot.slane %v222_v7, 4  ;;  %v335_v34 = vld [vmem:[%s910_s4] sm:$0xf]  ;;  %v419_v48 = vunpack.c.0.s8 %v418_v46  ;;  %s465_s26 = sshll.u32 %s215_s25, 4  ;;  %s643_s22 = sshll.u32 %s704_s10, 4  ;;  %s466_s26 = int_to_ptr.vmem [resolvable:$true] %s465_s26  ;;  %s644_s22 = int_to_ptr.vmem [resolvable:$false] %s643_s22 }
  0x1a   : > { %561 = vmatprep.subr.mxu0 %v701_v1  ;;  %v230_v11 = vsel %vm221_vm1, %v229_v8, 0.0  ;;  %591 = vmatpush3.msk.msra.mxu1 %vm340_vm3, %v335_v34  ;;  %v414_v55 = vld [vmem:[%s907_s1] sm:$0x1]  ;;  %s639_s9 = scalar_lea.vmem %s466_s26, 32  ;;  %s645_s11 = scalar_lea.vmem %s644_s22, 64 }
  0x1b   : > { %562 = vmatpush3.msra.mxu0 %v251_v4  ;;  %v224_v12 = vadd.f32 %v223_v9, %v222_v7  ;;  %v231_v13 = vrot.slane %v230_v11, 4  ;;  %v422_v50 = vsub.s32 %v419_v48, %v421_v49  ;;  %v415_v59 = vld [vmem:[%s908_s2] sm:$0x1]  ;;  %p640_p11 = scmp.ne.s32.totalorder %s466_s26, %s639_s9  ;;  %p646_p0 = scmp.lt.s32.totalorder %s466_s26, %s644_s22 }
  0x1c   : > { %563 = vmatprep.subr.mxu0 %v701_v1  ;;  %p647_p1 = scmp.lt.s32.totalorder %s645_s11, %s639_s9 }
  0x1d   : > { %564 = vmatpush3.msra.mxu0 %v250_v6  ;;  %v232_v15 = vadd.f32 %v231_v13, %v230_v11  ;;  %v225_v17 = vrot.slane %v224_v12, 2  ;;  %p641_p12 = pnand %p640_p11, %p773_p5 }
  0x1e   : > { %565 = vmatprep.subr.mxu0 %v701_v1  ;;  %p648_p2 = por %p647_p1, %p646_p0 }
  0x1f   : > { %566 = vmatpush3.msra.mxu0 %v249_v10  ;;  %v233_v18 = vrot.slane %v232_v15, 2  ;;  %v226_v21 = vadd.f32 %v225_v17, %v224_v12  ;;  %p642_p13 = pneg %p641_p12 }
  0x20   : > { %567 = vmatprep.subr.mxu0 %v701_v1 }
  0x21   : > { %568 = vmatpush3.msra.mxu0 %v248_v14  ;;  %v234_v22 = vadd.f32 %v233_v18, %v232_v15  ;;  %v227_v25 = vrot.slane %v226_v21, 1  ;;  %p649_p3 = pnand %p648_p2, %p642_p13 }
  0x22   : > { %569 = vmatprep.subr.mxu0 %v701_v1 }
  0x23   : > { %570 = vmatpush3.msra.mxu0 %v247_v16  ;;  %v235_v26 = vrot.slane %v234_v22, 1  ;;  %v228_v29 = vadd.f32 %v227_v25, %v226_v21 }
  0x24   : > { %571 = vmatprep.subr.mxu0 %v701_v1 }
  0x25   : > { %572 = vmatpush3.msra.mxu0 %v246_v19  ;;  %v236_v30 = vadd.f32 %v235_v26, %v234_v22 }
  0x26   : > { %573 = vmatprep.subr.mxu0 %v701_v1 }
  0x27   : > { %574 = vmatpush3.msra.mxu0 %v245_v20  ;;  %v238_v33 = vsel %vm237_vm2, %v228_v29, %v236_v30 }
  0x28   : > { %575 = vmatprep.subr.mxu0 %v701_v1 }
  0x29   : > { %576 = vmatpush3.msra.mxu0 %v244_v23 }
  0x2a   : > { %577 = vmatprep.subr.mxu0 %v701_v1 }
  0x2b   : > { %578 = vmatpush3.msra.mxu0 %v243_v24 }
  0x2c   : > { %579 = vmatprep.subr.mxu0 %v701_v1 }
  0x2d   : > { %580 = vmatpush3.msra.mxu0 %v242_v27 }
  0x2e   : > { %581 = vmatprep.subr.mxu0 %v701_v1 }
  0x2f   : > { %582 = vmatpush3.msra.mxu0 %v241_v28 }
  0x30   : > { %583 = vmatprep.subr.mxu0 %v701_v1 }
  0x31   : > { %584 = vmatpush3.msra.mxu0 %v240_v31 }
  0x32   : > { %585 = vmatprep.subr.mxu0 %v701_v1 }
  0x33   : > { %586 = vmatpush3.msra.mxu0 %v239_v32 }
  0x34   : > { %588 = vmatmul.mubr.f32.vlgmr.msra.gmra.mxu0 %v238_v33 }
  0xf4   : > { %v321_v35 = vpop.f32.mrf.mxu0 }
  0xf5   : > { %v325_v36 = vmul.f32 0.015625, %v321_v35 }
  0xf6   : > { %v589_v37 = vpop.f32.mrf.mxu0 }
  0xf7   : > { %v326_v38 = vmul.f32 %v325_v36, %v325_v36 }
  0xf9   : > { %v328_v39 = vrot.slane %v326_v38, 7 }
  0xfb   : > { %v330_v40 = vsub.f32 %v325_v36, %v328_v39 }
  0xfd   : > { %v331_v41 = vmax.f32 %v330_v40, 0.0 }
  0xff   : > { %v332_v42 = vadd.f32 1e-05, %v331_v41 }
 0x101   : > { %637 = vrsqrt.f32 %v332_v42 }
 0x10e   : > { %v638_v43 = vpop.eup %637 }
 0x10f   : > { %v334_v44 = vsel %vm237_vm2, %v325_v36, %v638_v43 }
 0x110   : > { %593 = vmatmul.mubr.msk.f32.vlgmr.msra.gmra.mxu1 %vm336_vm4, %v334_v44 }
 0x1d0   : > { %v410_v51 = vpop.f32.mrf.mxu1 }
 0x1d1   : > { %v423_v52 = vrot.slane %v410_v51, %v422_v50 }
 0x1d2   : > { %v594_v53 = vpop.f32.mrf.mxu1 }
 0x1d3   : > { %v424_v54 = vcombine.high %v423_v52, %v423_v52 }
 0x1d5   : > { %v431_v56 = vrot.slane %v424_v54, %v422_v50 }
 0x1d7   : > { %v433_v58 = vmul.f32 %v431_v56, %v414_v55 }
 0x1d9   : > { %v434_v60 = vmul.f32 %v433_v58, %v410_v51  ;;  %v440_v61 = vrot.slane %v433_v58, %v439_v57 }
 0x1db   : > { %v435_v62 = vsub.f32 %v415_v59, %v434_v60  ;;  %v442_v0 = vmul.f32 %v440_v61, %v806_v5 }
 0x1dd   : > { %v447_v63 = vrot.slane %v435_v62, %v439_v57 }
 0x1df   : > { %v449_v1 = vadd.f32 %v447_v63, %v442_v0 }
 0x1e1   : > { %450 = vst [vmem:[%s215_s25] sm:$0x3] %v449_v1 }
 0x1e2   : > { %652 = shalt.err (!%p649_p3)
}
 0x1e3   : > { %s653_s13 = scalar_lea.hbm %s463_s7, 32  ;;  %s657_s15 = scalar_lea.hbm %s911_s5, 64 }
 0x1e4   : > { %p654_p4 = scmp.ne.s32.totalorder %s463_s7, %s653_s13  ;;  %p658_p9 = scmp.lt.s32.totalorder %s463_s7, %s911_s5 }
 0x1e5   : > { %p659_p10 = scmp.lt.s32.totalorder %s657_s15, %s653_s13 }
 0x1e6   : > { %p655_p7 = pnand %p654_p4, %p773_p5 }
 0x1e7   : > { %p660_p11 = por %p659_p10, %p658_p9 }
 0x1e8   : > { %p656_p8 = pneg %p655_p7 }
 0x1ea   : > { %p661_p12 = pnand %p660_p11, %p656_p8 }
 0x1ec   : > { %664 = shalt.err (!%p661_p12)
}
 0x1ed   : > { %595 = dma.vmem_to_hbm [thread:$0]  (%p773_p5), %s466_s26, 32, %s463_s7, %s452_s8  }
 0x1ee PF: > { %p601_p13 = scmp.ge.s32.totalorder %s699_s21, 2  ;;  %s477_s23 = sand.u32 1, %s687_s18  }
 0x1ef   : > { %s478_s25 = scalar_lea.sflag [#allocation3], %s477_s23 }
 0x1f0   : > { %p598_p0 = pnand %p601_p13, %p777_p6 }
 0x1f2   : > { %p599_p1 = pneg %p598_p0 }
 0x1f4   : > { %682 = dma.done.wait (%p599_p1), %s478_s25, 32  }
 0x1f5   : > { %684 = vsyncadd (%p599_p1), %s478_s25, 4294967264  ;;  %p15_p2 = scmp.ge.s32.totalorder %s760_s24, 4   ;;  %s914_s18 = smov %s691_s19 }
 0x1f6   : > { %s915_s19 = smov %s695_s20  ;;  %s916_s20 = smov %s771_s27 }
 0x1f7   : > { %s917_s21 = smov %s760_s24  ;;  %17 = sbr.rel (!%p15_p2) target bundleno = 3 (0x3), region = 75 }
 0x1fc   :  { %483 = vsyncpa [#allocation3], 1 }
 0x1fd   :  { %485 = vsyncpa [#allocation3 + $0x1], 1 }

</bundles_post_ra>
